<compile_context>
chip_gen: v5e
topology: v5e:2x2
jax: 0.10.0
libtpu: 0.0.40
codegen_flags: <defaults>
</compile_context>

<pallas_src>
import functools

import jax
import jax.numpy as jnp
from jax.experimental import pallas as pl
from jax.experimental.pallas import tpu as pltpu


_LANE = 128
_SUBLANES = 8
_MAX_TILE = 8192          # lanes (boxes) per grid step
_FAST_PATH_BS = 512       # below this, the fused pure-JAX path wins


def _round_up(x, m):
    return (x + m - 1) // m * m


def _boxloss_kernel(x_ref, out_ref, acc_l1, acc_giou, *, w_l1, w_giou):
    """x_ref:   (8, S, 128) -- dim0: rows 0-3 pred (cx,cy,w,h), rows 4-7 gt.
    out_ref: (1, 128) f32  -- lane 0 = 5*l1/bs, lane 1 = 2*giou/bs.
    acc_l1, acc_giou: (S, 128) f32 VMEM accumulators (resident across steps)."""
    step = pl.program_id(0)
    last = pl.num_programs(0) - 1

    @pl.when(step == 0)
    def _():
        acc_l1[...] = jnp.zeros_like(acc_l1)
        acc_giou[...] = jnp.zeros_like(acc_giou)

    x = x_ref[...].astype(jnp.float32)              # (8, S, 128)
    pcx, pcy, pw, ph = x[0], x[1], x[2], x[3]       # each (S, 128)
    gcx, gcy, gw, gh = x[4], x[5], x[6], x[7]

    # ---- L1 per-box (summed over the 4 coords), pure VPU ----
    l1 = (jnp.abs(pcx - gcx) + jnp.abs(pcy - gcy)
          + jnp.abs(pw - gw) + jnp.abs(ph - gh))

    # ---- per-box diagonal GIoU ----
    px1, px2 = pcx - 0.5 * pw, pcx + 0.5 * pw
    py1, py2 = pcy - 0.5 * ph, pcy + 0.5 * ph
    gx1, gx2 = gcx - 0.5 * gw, gcx + 0.5 * gw
    gy1, gy2 = gcy - 0.5 * gh, gcy + 0.5 * gh

    area_p = (px2 - px1) * (py2 - py1)
    area_g = (gx2 - gx1) * (gy2 - gy1)

    iw = jnp.maximum(jnp.minimum(px2, gx2) - jnp.maximum(px1, gx1), 0.0)
    ih = jnp.maximum(jnp.minimum(py2, gy2) - jnp.maximum(py1, gy1), 0.0)
    inter = iw * ih
    union = area_p + area_g - inter
    iou = inter / union

    ow = jnp.maximum(jnp.maximum(px2, gx2) - jnp.minimum(px1, gx1), 0.0)
    oh = jnp.maximum(jnp.maximum(py2, gy2) - jnp.minimum(py1, gy1), 0.0)
    area_c = ow * oh
    giou = iou - (area_c - union) / area_c

    # ---- per-step accumulation: full-width VPU adds only ----
    acc_l1[...] += l1
    acc_giou[...] += 1.0 - giou

    # ---- single cross-lane/sublane reduce + weighted combine, once ----
    @pl.when(step == last)
    def _():
        l1_sum = jnp.sum(acc_l1[...])
        giou_sum = jnp.sum(acc_giou[...])
        lane = jax.lax.broadcasted_iota(jnp.int32, (1, _LANE), 1)
        out_ref[...] = jnp.where(
            lane == 0, l1_sum * w_l1,
            jnp.where(lane == 1, giou_sum * w_giou, 0.0))


def box_loss(pred, gt, *, small_bs_fast_path=True, max_tile_lanes=_MAX_TILE):
    """pred, gt: (bs, 4) boxes in (cx, cy, w, h) format.
    Returns (loss, 5*l1_loss, 2*giou_loss) matching the PyTorch BoxLoss.forward."""
    bs = pred.shape[0]
    assert pred.shape == (bs, 4) and gt.shape == (bs, 4)

    if small_bs_fast_path and bs <= _FAST_PATH_BS:
        # At this size the whole computation is <100 VPU ops; the fused XLA
        # path beats the pallas_call launch + DMA setup overhead.
        return _box_loss_ref(pred.astype(jnp.float32), gt.astype(jnp.float32))

    # Keep bf16 inputs bf16 for the DMA (half the HBM bytes on v5e); upcast
    # to f32 inside the kernel.  Everything else computes/transfers in f32.
    common = jnp.promote_types(pred.dtype, gt.dtype)
    pack_dtype = common if common in (jnp.dtype(jnp.bfloat16),
                                      jnp.dtype(jnp.float32)) else jnp.dtype(jnp.float32)
    pred = pred.astype(pack_dtype)
    gt = gt.astype(pack_dtype)

    # ---- tiling over the box axis (lanes) ----
    n_lanes = _round_up(bs, _LANE)
    if n_lanes <= max_tile_lanes:
        tile = n_lanes                                   # single step; block == array
    else:
        step_quant = _LANE * _SUBLANES                   # 1024: keep sublanes % 8 == 0
        cap = max(_round_up(max_tile_lanes, step_quant), step_quant)
        steps0 = pl.cdiv(n_lanes, cap)
        tile = _round_up(pl.cdiv(n_lanes, steps0), step_quant)
    steps = pl.cdiv(n_lanes, tile)
    n_pad = tile * steps
    sub = tile // _LANE                                  # sublanes per block

    # Pack: (8, n_pad) with rows 0-3 pred, 4-7 gt.  Padding with 0.5 makes the
    # padded lanes identical, valid (non-degenerate) boxes -> they contribute
    # exactly 0 to both loss terms and never divide by zero.
    x = jnp.concatenate([pred, gt], axis=1).T            # (8, bs)
    x = jnp.pad(x, ((0, 0), (0, n_pad - bs)), constant_values=0.5)
    x = x.reshape(8, n_pad // _LANE, _LANE)              # (8, S_total, 128)

    kernel = functools.partial(_boxloss_kernel, w_l1=5.0 / bs, w_giou=2.0 / bs)

    out = pl.pallas_call(
        kernel,
        out_shape=jax.ShapeDtypeStruct((1, _LANE), jnp.float32),
        grid=(steps,),
        in_specs=[pl.BlockSpec((8, sub, _LANE), lambda i: (0, i, 0))],
        out_specs=pl.BlockSpec((1, _LANE), lambda i: (0, 0)),
        scratch_shapes=[pltpu.VMEM((sub, _LANE), jnp.float32),
                        pltpu.VMEM((sub, _LANE), jnp.float32)],
        compiler_params=pltpu.CompilerParams(
            dimension_semantics=("arbitrary",)),
    )(x)

    l1_term = out[0, 0]
    giou_term = out[0, 1]
    return l1_term + giou_term, l1_term, giou_term


def _box_loss_ref(pred, gt):
    """Pure-JAX reference mirroring the PyTorch forward (also the small-bs fast path)."""
    bs = pred.shape[0]
    l1 = jnp.sum(jnp.abs(pred - gt)) / bs

    def to_xyxy(b):
        cx, cy, w, h = b[:, 0], b[:, 1], b[:, 2], b[:, 3]
        return jnp.stack([cx - 0.5 * w, cy - 0.5 * h,
                          cx + 0.5 * w, cy + 0.5 * h], -1)

    p = to_xyxy(pred)
    g = to_xyxy(gt)
    area_p = (p[:, 2] - p[:, 0]) * (p[:, 3] - p[:, 1])
    area_g = (g[:, 2] - g[:, 0]) * (g[:, 3] - g[:, 1])
    iw = jnp.clip(jnp.minimum(p[:, 2], g[:, 2]) - jnp.maximum(p[:, 0], g[:, 0]), 0)
    ih = jnp.clip(jnp.minimum(p[:, 3], g[:, 3]) - jnp.maximum(p[:, 1], g[:, 1]), 0)
    inter = iw * ih
    union = area_p + area_g - inter
    iou = inter / union
    ow = jnp.clip(jnp.maximum(p[:, 2], g[:, 2]) - jnp.minimum(p[:, 0], g[:, 0]), 0)
    oh = jnp.clip(jnp.maximum(p[:, 3], g[:, 3]) - jnp.minimum(p[:, 1], g[:, 1]), 0)
    area_c = ow * oh
    giou = iou - (area_c - union) / area_c
    loss_giou = jnp.sum(1.0 - giou) / bs
    return 5 * l1 + 2 * loss_giou, 5 * l1, 2 * loss_giou


if __name__ == "__main__":
    key = jax.random.PRNGKey(0)

    def make_boxes(k, bs):
        k1, k2 = jax.random.split(k)
        centers = jax.random.uniform(k1, (bs, 2), minval=0.3, maxval=0.7)
        sizes = jax.random.uniform(k2, (bs, 2), minval=0.1, maxval=0.4)
        return jnp.concatenate([centers, sizes], axis=-1).astype(jnp.float32)

    kp, kg, kp2, kg2 = jax.random.split(key, 4)

    # --- small bs (the module's typical case), single-step grid, Pallas path forced ---
    bs = 8
    pred = make_boxes(kp, bs)
    gt = make_boxes(kg, bs)
    out = box_loss(pred, gt, small_bs_fast_path=False)
    jax.block_until_ready(out)
    ref = _box_loss_ref(pred, gt)
    for a, b in zip(out, ref):
        assert jnp.allclose(a, b, rtol=1e-5, atol=1e-5), (a, b)

    # --- larger bs, multi-step grid exercising the resident accumulators ---
    bs2 = 3000
    pred2 = make_boxes(kp2, bs2)
    gt2 = make_boxes(kg2, bs2)
    out2 = box_loss(pred2, gt2, max_tile_lanes=1024)      # 3 grid steps
    jax.block_until_ready(out2)
    ref2 = _box_loss_ref(pred2, gt2)
    for a, b in zip(out2, ref2):
        assert jnp.allclose(a, b, rtol=1e-4, atol=1e-5), (a, b)

    print("KERNEL_OK")
</pallas_src>

<mosaic_0001>
module attributes {stable_mosaic.version = 11 : i64} {
  func.func @_boxloss_kernel(%arg0: i32, %arg1: memref<8x1x128xf32, #tpu.memory_space<vmem>>, %arg2: memref<1x128xf32, #tpu.memory_space<vmem>>, %arg3: memref<1x128xf32, #tpu.memory_space<vmem>>, %arg4: memref<1x128xf32, #tpu.memory_space<vmem>>) attributes {dimension_semantics = [#tpu.dimension_semantics<arbitrary>], iteration_bounds = array<i64: 1>, scalar_prefetch = 0 : i64, scratch_operands = 2 : i64, tpu.core_type = #tpu.core_type<tc>, window_params = [{transform_indices = @transform_0, window_bounds = array<i64: 8, 1, 128>}, {pipeline_mode = #tpu.pipeline_mode<synchronous>, transform_indices = @transform_1, window_bounds = array<i64: 1, 128>}]} {
    %c0_i32 = arith.constant 0 : i32
    %0 = arith.cmpi eq, %arg0, %c0_i32 : i32
    %1 = arith.extui %0 : i1 to i32
    %c0_i32_0 = arith.constant 0 : i32
    %2 = arith.cmpi ne, %1, %c0_i32_0 : i32
    scf.if %2 {
      %cst_25 = arith.constant 0.000000e+00 : f32
      %100 = vector.broadcast %cst_25 : f32 to vector<1x128xf32>
      %c0_26 = arith.constant 0 : index
      %c0_27 = arith.constant 0 : index
      %101 = vector.load %arg3[%c0_26, %c0_27] : memref<1x128xf32, #tpu.memory_space<vmem>>, vector<1x128xf32>
      tpu.vector_store %arg3[%c0_26, %c0_27], %100 {strides = array<i32>} : memref<1x128xf32, #tpu.memory_space<vmem>>, vector<1x128xf32>,
      %cst_28 = arith.constant 0.000000e+00 : f32
      %102 = vector.broadcast %cst_28 : f32 to vector<1x128xf32>
      %c0_29 = arith.constant 0 : index
      %c0_30 = arith.constant 0 : index
      %103 = vector.load %arg4[%c0_29, %c0_30] : memref<1x128xf32, #tpu.memory_space<vmem>>, vector<1x128xf32>
      tpu.vector_store %arg4[%c0_29, %c0_30], %102 {strides = array<i32>} : memref<1x128xf32, #tpu.memory_space<vmem>>, vector<1x128xf32>,
    } else {
    }
    %c0 = arith.constant 0 : index
    %c0_1 = arith.constant 0 : index
    %c0_2 = arith.constant 0 : index
    %3 = vector.load %arg1[%c0, %c0_1, %c0_2] : memref<8x1x128xf32, #tpu.memory_space<vmem>>, vector<8x1x128xf32>
    %4 = vector.extract_strided_slice %3 {offsets = [0, 0, 0], sizes = [1, 1, 128], strides = [1, 1, 1]} : vector<8x1x128xf32> to vector<1x1x128xf32>
    %5 = vector.shape_cast %4 : vector<1x1x128xf32> to vector<1x128xf32>
    %6 = vector.extract_strided_slice %3 {offsets = [1, 0, 0], sizes = [1, 1, 128], strides = [1, 1, 1]} : vector<8x1x128xf32> to vector<1x1x128xf32>
    %7 = vector.shape_cast %6 : vector<1x1x128xf32> to vector<1x128xf32>
    %8 = vector.extract_strided_slice %3 {offsets = [2, 0, 0], sizes = [1, 1, 128], strides = [1, 1, 1]} : vector<8x1x128xf32> to vector<1x1x128xf32>
    %9 = vector.shape_cast %8 : vector<1x1x128xf32> to vector<1x128xf32>
    %10 = vector.extract_strided_slice %3 {offsets = [3, 0, 0], sizes = [1, 1, 128], strides = [1, 1, 1]} : vector<8x1x128xf32> to vector<1x1x128xf32>
    %11 = vector.shape_cast %10 : vector<1x1x128xf32> to vector<1x128xf32>
    %12 = vector.extract_strided_slice %3 {offsets = [4, 0, 0], sizes = [1, 1, 128], strides = [1, 1, 1]} : vector<8x1x128xf32> to vector<1x1x128xf32>
    %13 = vector.shape_cast %12 : vector<1x1x128xf32> to vector<1x128xf32>
    %14 = vector.extract_strided_slice %3 {offsets = [5, 0, 0], sizes = [1, 1, 128], strides = [1, 1, 1]} : vector<8x1x128xf32> to vector<1x1x128xf32>
    %15 = vector.shape_cast %14 : vector<1x1x128xf32> to vector<1x128xf32>
    %16 = vector.extract_strided_slice %3 {offsets = [6, 0, 0], sizes = [1, 1, 128], strides = [1, 1, 1]} : vector<8x1x128xf32> to vector<1x1x128xf32>
    %17 = vector.shape_cast %16 : vector<1x1x128xf32> to vector<1x128xf32>
    %18 = vector.extract_strided_slice %3 {offsets = [7, 0, 0], sizes = [1, 1, 128], strides = [1, 1, 1]} : vector<8x1x128xf32> to vector<1x1x128xf32>
    %19 = vector.shape_cast %18 : vector<1x1x128xf32> to vector<1x128xf32>
    %20 = arith.subf %5, %13 : vector<1x128xf32>
    %21 = math.absf %20 : vector<1x128xf32>
    %22 = arith.subf %7, %15 : vector<1x128xf32>
    %23 = math.absf %22 : vector<1x128xf32>
    %24 = arith.addf %21, %23 : vector<1x128xf32>
    %25 = arith.subf %9, %17 : vector<1x128xf32>
    %26 = math.absf %25 : vector<1x128xf32>
    %27 = arith.addf %24, %26 : vector<1x128xf32>
    %28 = arith.subf %11, %19 : vector<1x128xf32>
    %29 = math.absf %28 : vector<1x128xf32>
    %30 = arith.addf %27, %29 : vector<1x128xf32>
    %cst = arith.constant 5.000000e-01 : f32
    %31 = vector.broadcast %cst : f32 to vector<1x128xf32>
    %32 = arith.mulf %31, %9 : vector<1x128xf32>
    %33 = arith.subf %5, %32 : vector<1x128xf32>
    %cst_3 = arith.constant 5.000000e-01 : f32
    %34 = vector.broadcast %cst_3 : f32 to vector<1x128xf32>
    %35 = arith.mulf %34, %9 : vector<1x128xf32>
    %36 = arith.addf %5, %35 : vector<1x128xf32>
    %cst_4 = arith.constant 5.000000e-01 : f32
    %37 = vector.broadcast %cst_4 : f32 to vector<1x128xf32>
    %38 = arith.mulf %37, %11 : vector<1x128xf32>
    %39 = arith.subf %7, %38 : vector<1x128xf32>
    %cst_5 = arith.constant 5.000000e-01 : f32
    %40 = vector.broadcast %cst_5 : f32 to vector<1x128xf32>
    %41 = arith.mulf %40, %11 : vector<1x128xf32>
    %42 = arith.addf %7, %41 : vector<1x128xf32>
    %cst_6 = arith.constant 5.000000e-01 : f32
    %43 = vector.broadcast %cst_6 : f32 to vector<1x128xf32>
    %44 = arith.mulf %43, %17 : vector<1x128xf32>
    %45 = arith.subf %13, %44 : vector<1x128xf32>
    %cst_7 = arith.constant 5.000000e-01 : f32
    %46 = vector.broadcast %cst_7 : f32 to vector<1x128xf32>
    %47 = arith.mulf %46, %17 : vector<1x128xf32>
    %48 = arith.addf %13, %47 : vector<1x128xf32>
    %cst_8 = arith.constant 5.000000e-01 : f32
    %49 = vector.broadcast %cst_8 : f32 to vector<1x128xf32>
    %50 = arith.mulf %49, %19 : vector<1x128xf32>
    %51 = arith.subf %15, %50 : vector<1x128xf32>
    %cst_9 = arith.constant 5.000000e-01 : f32
    %52 = vector.broadcast %cst_9 : f32 to vector<1x128xf32>
    %53 = arith.mulf %52, %19 : vector<1x128xf32>
    %54 = arith.addf %15, %53 : vector<1x128xf32>
    %55 = arith.subf %36, %33 : vector<1x128xf32>
    %56 = arith.subf %42, %39 : vector<1x128xf32>
    %57 = arith.mulf %55, %56 : vector<1x128xf32>
    %58 = arith.subf %48, %45 : vector<1x128xf32>
    %59 = arith.subf %54, %51 : vector<1x128xf32>
    %60 = arith.mulf %58, %59 : vector<1x128xf32>
    %61 = arith.minimumf %36, %48 : vector<1x128xf32>
    %62 = arith.maximumf %33, %45 : vector<1x128xf32>
    %63 = arith.subf %61, %62 : vector<1x128xf32>
    %cst_10 = arith.constant 0.000000e+00 : f32
    %64 = vector.broadcast %cst_10 : f32 to vector<1x128xf32>
    %65 = arith.maximumf %63, %64 : vector<1x128xf32>
    %66 = arith.minimumf %42, %54 : vector<1x128xf32>
    %67 = arith.maximumf %39, %51 : vector<1x128xf32>
    %68 = arith.subf %66, %67 : vector<1x128xf32>
    %cst_11 = arith.constant 0.000000e+00 : f32
    %69 = vector.broadcast %cst_11 : f32 to vector<1x128xf32>
    %70 = arith.maximumf %68, %69 : vector<1x128xf32>
    %71 = arith.mulf %65, %70 : vector<1x128xf32>
    %72 = arith.addf %57, %60 : vector<1x128xf32>
    %73 = arith.subf %72, %71 : vector<1x128xf32>
    %74 = arith.divf %71, %73 : vector<1x128xf32>
    %75 = arith.maximumf %36, %48 : vector<1x128xf32>
    %76 = arith.minimumf %33, %45 : vector<1x128xf32>
    %77 = arith.subf %75, %76 : vector<1x128xf32>
    %cst_12 = arith.constant 0.000000e+00 : f32
    %78 = vector.broadcast %cst_12 : f32 to vector<1x128xf32>
    %79 = arith.maximumf %77, %78 : vector<1x128xf32>
    %80 = arith.maximumf %42, %54 : vector<1x128xf32>
    %81 = arith.minimumf %39, %51 : vector<1x128xf32>
    %82 = arith.subf %80, %81 : vector<1x128xf32>
    %cst_13 = arith.constant 0.000000e+00 : f32
    %83 = vector.broadcast %cst_13 : f32 to vector<1x128xf32>
    %84 = arith.maximumf %82, %83 : vector<1x128xf32>
    %85 = arith.mulf %79, %84 : vector<1x128xf32>
    %86 = arith.subf %85, %73 : vector<1x128xf32>
    %87 = arith.divf %86, %85 : vector<1x128xf32>
    %88 = arith.subf %74, %87 : vector<1x128xf32>
    %c0_14 = arith.constant 0 : index
    %c0_15 = arith.constant 0 : index
    %89 = vector.load %arg3[%c0_14, %c0_15] : memref<1x128xf32, #tpu.memory_space<vmem>>, vector<1x128xf32>
    %90 = arith.addf %89, %30 : vector<1x128xf32>
    %c0_16 = arith.constant 0 : index
    %c0_17 = arith.constant 0 : index
    %91 = vector.load %arg3[%c0_16, %c0_17] : memref<1x128xf32, #tpu.memory_space<vmem>>, vector<1x128xf32>
    tpu.vector_store %arg3[%c0_16, %c0_17], %90 {strides = array<i32>} : memref<1x128xf32, #tpu.memory_space<vmem>>, vector<1x128xf32>,
    %c0_18 = arith.constant 0 : index
    %c0_19 = arith.constant 0 : index
    %92 = vector.load %arg4[%c0_18, %c0_19] : memref<1x128xf32, #tpu.memory_space<vmem>>, vector<1x128xf32>
    %cst_20 = arith.constant 1.000000e+00 : f32
    %93 = vector.broadcast %cst_20 : f32 to vector<1x128xf32>
    %94 = arith.subf %93, %88 : vector<1x128xf32>
    %95 = arith.addf %92, %94 : vector<1x128xf32>
    %c0_21 = arith.constant 0 : index
    %c0_22 = arith.constant 0 : index
    %96 = vector.load %arg4[%c0_21, %c0_22] : memref<1x128xf32, #tpu.memory_space<vmem>>, vector<1x128xf32>
    tpu.vector_store %arg4[%c0_21, %c0_22], %95 {strides = array<i32>} : memref<1x128xf32, #tpu.memory_space<vmem>>, vector<1x128xf32>,
    %c0_i32_23 = arith.constant 0 : i32
    %97 = arith.cmpi eq, %arg0, %c0_i32_23 : i32
    %98 = arith.extui %97 : i1 to i32
    %c0_i32_24 = arith.constant 0 : i32
    %99 = arith.cmpi ne, %98, %c0_i32_24 : i32
    scf.if %99 {
      %c0_25 = arith.constant 0 : index
      %c0_26 = arith.constant 0 : index
      %100 = vector.load %arg3[%c0_25, %c0_26] : memref<1x128xf32, #tpu.memory_space<vmem>>, vector<1x128xf32>
      %101 = vector.shape_cast %100 : vector<1x128xf32> to vector<1x1x128xf32>
      %cst_27 = arith.constant dense<0.000000e+00> : vector<1xf32>
      %102 = vector.multi_reduction <add>, %101, %cst_27 [1, 2] : vector<1x1x128xf32> to vector<1xf32>
      %103 = vector.shape_cast %102 : vector<1xf32> to vector<1x1x1xf32>
      %104 = vector.extract %103[0, 0, 0] : f32 from vector<1x1x1xf32>
      %c0_28 = arith.constant 0 : index
      %c0_29 = arith.constant 0 : index
      %105 = vector.load %arg4[%c0_28, %c0_29] : memref<1x128xf32, #tpu.memory_space<vmem>>, vector<1x128xf32>
      %106 = vector.shape_cast %105 : vector<1x128xf32> to vector<1x1x128xf32>
      %cst_30 = arith.constant dense<0.000000e+00> : vector<1xf32>
      %107 = vector.multi_reduction <add>, %106, %cst_30 [1, 2] : vector<1x1x128xf32> to vector<1xf32>
      %108 = vector.shape_cast %107 : vector<1xf32> to vector<1x1x1xf32>
      %109 = vector.extract %108[0, 0, 0] : f32 from vector<1x1x1xf32>
      %110 = tpu.iota {dimensions = array<i32: 1>} : vector<1x128xi32>
      %c0_i32_31 = arith.constant 0 : i32
      %111 = vector.broadcast %c0_i32_31 : i32 to vector<1x128xi32>
      %112 = arith.cmpi eq, %110, %111 : vector<1x128xi32>
      %cst_32 = arith.constant 6.250000e-01 : f32
      %113 = arith.mulf %104, %cst_32 : f32
      %c1_i32 = arith.constant 1 : i32
      %114 = vector.broadcast %c1_i32 : i32 to vector<1x128xi32>
      %115 = arith.cmpi eq, %110, %114 : vector<1x128xi32>
      %cst_33 = arith.constant 2.500000e-01 : f32
      %116 = arith.mulf %109, %cst_33 : f32
      %cst_34 = arith.constant 0.000000e+00 : f32
      %117 = vector.broadcast %116 : f32 to vector<1x128xf32>
      %118 = vector.broadcast %cst_34 : f32 to vector<1x128xf32>
      %119 = arith.select %115, %117, %118 : vector<1x128xi1>, vector<1x128xf32>
      %120 = vector.broadcast %113 : f32 to vector<1x128xf32>
      %121 = arith.select %112, %120, %119 : vector<1x128xi1>, vector<1x128xf32>
      %c0_35 = arith.constant 0 : index
      %c0_36 = arith.constant 0 : index
      %122 = vector.load %arg2[%c0_35, %c0_36] : memref<1x128xf32, #tpu.memory_space<vmem>>, vector<1x128xf32>
      tpu.vector_store %arg2[%c0_35, %c0_36], %121 {strides = array<i32>} : memref<1x128xf32, #tpu.memory_space<vmem>>, vector<1x128xf32>,
    } else {
    }
    return
  }
  func.func @transform_0(%arg0: i32) -> (i32, i32, i32) {
    %c0_i32 = arith.constant 0 : i32
    %c0_i32_0 = arith.constant 0 : i32
    %c0_i32_1 = arith.constant 0 : i32
    return %c0_i32, %arg0, %c0_i32_0 : i32, i32, i32
  }
  func.func @transform_1(%arg0: i32) -> (i32, i32) {
    %c0_i32 = arith.constant 0 : i32
    %c0_i32_0 = arith.constant 0 : i32
    %c0_i32_1 = arith.constant 0 : i32
    return %c0_i32, %c0_i32_0 : i32, i32
  }
}

</mosaic_0001>

<bundles_post_ra>
// kernel: tpu_custom_call.1
= control target key start
LH: loop header
LB: loop body
LE: loop exit
PB: predicated region body
PF: predicated region fallthrough
CT: control target
= control target key end

     0   :  { %6 = vsyncpa [#allocation5], 0  ;;  %s269_s0 = inlined_call_operand.hbm [shape: f32[8,1,128], index: 0, kind: input, shape index: {}]   ;;  %s270_s1 = inlined_call_operand.hbm [shape: f32[1,128], index: 1, kind: output, shape index: {}]  }
   0x1   :  { %7 = vsyncpa [#allocation6], 0  ;;  %s12_s8 = sshll.u32 %s269_s0, 4  ;;  %s246_s9 = smov [#allocation4]   ;;  %s13_s8 = int_to_ptr.hbm [resolvable:$true] %s12_s8 }
   0x2   :  { %s14_s10 = sshll.u32 %s246_s9, 4  ;;  %s247_s11 = smov 16   ;;  %s15_s10 = int_to_ptr.vmem [resolvable:$true] %s14_s10 }
   0x3   :  { %s248_s12 = smov 1  }
   0x4   :  { %20 = dma.hbm_to_vmem [thread:$0]  %s13_s8, 128, %s15_s10, [#allocation5], %s247_s11, %s247_s11, %s248_s12  }
   0x5   :  { %242 = dma.done.wait [#allocation5], 128  }
   0x6   :  { %243 = vsyncadd [#allocation5], 4294967168  ;;  %v249_v0 = vmov 0.0   ;;  %v31_v1 = vld [vmem:[#allocation4] sm:$0x1]  ;;  %vm131_vm0 = vcmask 1040384  }
   0x7   :  { %29 = vst [vmem:[#allocation2] sm:$0x1] %v249_v0  ;;  %v32_v2 = vld [vmem:[#allocation4 + $0x1] sm:$0x1]  ;;  %v33_v3 = vld [vmem:[#allocation4 + $0x2] sm:$0x1] }
   0x8   :  { %30 = vst [vmem:[#allocation3] sm:$0x1] %v249_v0  ;;  %v34_v4 = vld [vmem:[#allocation4 + $0x3] sm:$0x1]  ;;  %v35_v5 = vld [vmem:[#allocation4 + $0x4] sm:$0x1] }
   0x9   :  { %v36_v6 = vld [vmem:[#allocation4 + $0x5] sm:$0x1]  ;;  %v37_v7 = vld [vmem:[#allocation4 + $0x6] sm:$0x1]  ;;  %v38_v8 = vld [vmem:[#allocation4 + $0x7] sm:$0x1]  ;;  %v39_v9 = vsub.f32 %v31_v1, %v35_v5 }
   0xa   :  { %v41_v10 = vsub.f32 %v32_v2, %v36_v6  ;;  %v50_v11 = vmul.f32 0.5, %v33_v3  ;;  %v53_v12 = vmul.f32 0.5, %v34_v4  ;;  %v44_v13 = vsub.f32 %v33_v3, %v37_v7  ;;  %s250_s13 = smov [#allocation7]   ;;  %s171_s20 = sshll.u32 %s270_s1, 4  ;;  %s172_s20 = int_to_ptr.hbm [resolvable:$true] %s171_s20 }
   0xb   :  { %v47_v14 = vsub.f32 %v34_v4, %v38_v8  ;;  %v56_v15 = vmul.f32 0.5, %v37_v7  ;;  %v59_v16 = vmul.f32 0.5, %v38_v8  ;;  %v40_v17 = vand.u32 2147483647, %v39_v9  ;;  %s169_s14 = sshll.u32 %s250_s13, 4  ;;  %s170_s14 = int_to_ptr.vmem [resolvable:$true] %s169_s14 }
   0xc   :  { %v42_v18 = vand.u32 2147483647, %v41_v10  ;;  %v51_v19 = vsub.f32 %v31_v1, %v50_v11  ;;  %v45_v20 = vand.u32 2147483647, %v44_v13  ;;  %v52_v21 = vadd.f32 %v50_v11, %v31_v1 }
   0xd   :  { %v54_v22 = vsub.f32 %v32_v2, %v53_v12  ;;  %v55_v23 = vadd.f32 %v53_v12, %v32_v2  ;;  %v48_v25 = vand.u32 2147483647, %v47_v14  ;;  %v57_v26 = vsub.f32 %v35_v5, %v56_v15 }
   0xe   :  { %v43_v24 = vadd.f32 %v42_v18, %v40_v17  ;;  %v58_v27 = vadd.f32 %v56_v15, %v35_v5  ;;  %v60_v28 = vsub.f32 %v36_v6, %v59_v16  ;;  %v61_v29 = vadd.f32 %v59_v16, %v36_v6  ;;  %v120_v39 = vld [vmem:[#allocation2] sm:$0x1] }
   0xf   :  { %v62_v30 = vsub.f32 %v52_v21, %v51_v19  ;;  %v63_v31 = vsub.f32 %v55_v23, %v54_v22  ;;  %v95_v35 = vmin.f32 %v51_v19, %v57_v26  ;;  %v69_v44 = vmax.f32 %v51_v19, %v57_v26 }
  0x10   :  { %v46_v32 = vadd.f32 %v45_v20, %v43_v24  ;;  %v65_v33 = vsub.f32 %v58_v27, %v57_v26  ;;  %v94_v34 = vmax.f32 %v52_v21, %v58_v27  ;;  %v66_v36 = vsub.f32 %v61_v29, %v60_v28 }
  0x11   :  { %v98_v37 = vmax.f32 %v55_v23, %v61_v29  ;;  %v99_v38 = vmin.f32 %v54_v22, %v60_v28  ;;  %v64_v40 = vmul.f32 %v63_v31, %v62_v30  ;;  %v68_v43 = vmin.f32 %v52_v21, %v58_v27 }
  0x12   :  { %v49_v41 = vadd.f32 %v48_v25, %v46_v32  ;;  %v96_v42 = vsub.f32 %v94_v34, %v95_v35  ;;  %v67_v46 = vmul.f32 %v66_v36, %v65_v33  ;;  %v72_v47 = vmin.f32 %v55_v23, %v61_v29 }
  0x13   :  { %v100_v45 = vsub.f32 %v98_v37, %v99_v38  ;;  %v73_v48 = vmax.f32 %v54_v22, %v60_v28  ;;  %v70_v51 = vsub.f32 %v68_v43, %v69_v44  ;;  %v123_v22 = vld [vmem:[#allocation3] sm:$0x1] }
  0x14   :  { %v97_v49 = vmax.f32 %v96_v42, 0.0  ;;  %v121_v50 = vadd.f32 %v120_v39, %v49_v41  ;;  %v77_v57 = vadd.f32 %v67_v46, %v64_v40  ;;  %v153_v41 = vlaneseq }
  0x15   :  { %v101_v52 = vmax.f32 %v100_v45, 0.0  ;;  %v74_v53 = vsub.f32 %v72_v47, %v73_v48  ;;  %v71_v54 = vmax.f32 %v70_v51, 0.0 }
  0x16   :  { %122 = vst [vmem:[#allocation2] sm:$0x1] %v121_v50  ;;  %v154_v42 = vand.u32 127, %v153_v41 }
  0x17   :  { %v102_v55 = vmul.f32 %v101_v52, %v97_v49  ;;  %v75_v56 = vmax.f32 %v74_v53, 0.0 }
  0x18   :  { %vm157_vm9 = vcmp.eq.s32.totalorder %v154_v42, 1  ;;  %vm155_vm10 = vcmp.eq.s32.totalorder %v154_v42, 0 }
  0x19   :  { %190 = vrcp.f32 %v102_v55  ;;  %v76_v58 = vmul.f32 %v75_v56, %v71_v54  ;;  %v113_v0 = vand.u32 2147483647, %v102_v55  ;;  %v115_v1 = vand.u32 2147483648, %v102_v55 }
  0x1a   :  { %vm109_vm1 = vweird.f32 %v102_v55 }
  0x1b   :  { %v78_v59 = vsub.f32 %v77_v57, %v76_v58  ;;  %vm114_vm5 = vcmp.eq.f32.partialorder %v113_v0, 8.507059e+37  ;;  %v116_v7 = vor.u32 1.1754944e-38, %v115_v1 }
  0x1d   :  { %v130_v60 = vld [vmem:[#allocation2] sm:$0x1]  ;;  %192 = vrcp.f32 %v78_v59  ;;  %vm84_vm3 = vweird.f32 %v78_v59  ;;  %v90_v6 = vand.u32 2147483648, %v78_v59  ;;  %v88_v9 = vand.u32 2147483647, %v78_v59 }
  0x1e   :  { %v132_v61 = vsel %vm131_vm0, %v130_v60, 0.0  ;;  %v103_v12 = vsub.f32 %v102_v55, %v78_v59 }
  0x1f   :  { %v191_v62 = vpop.eup %190  ;;  %133 = vadd.xlane.f32.xlu0 %v132_v61  ;;  %v91_v14 = vor.u32 1.1754944e-38, %v90_v6  ;;  %vm89_vm8 = vcmp.eq.f32.partialorder %v88_v9, 8.507059e+37 }
  0x20   :  { %v105_v63 = vmul.f32 %v191_v62, %v102_v55  ;;  %vm110_vm2 = vweird.f32 %v191_v62 }
  0x21   :  { %vm111_vm4 = vmor %vm109_vm1, %vm110_vm2 }
  0x22   :  { %v106_v2 = vsub.f32 1.0, %v105_v63 }
  0x23   :  { %v193_v3 = vpop.eup %192 }
  0x24   :  { %v80_v4 = vmul.f32 %v193_v3, %v78_v59  ;;  %v107_v5 = vmul.f32 %v191_v62, %v106_v2  ;;  %vm85_vm6 = vweird.f32 %v193_v3 }
  0x25   :  { %vm86_vm7 = vmor %vm84_vm3, %vm85_vm6 }
  0x26   :  { %v81_v8 = vsub.f32 1.0, %v80_v4  ;;  %v108_v10 = vadd.f32 %v191_v62, %v107_v5 }
  0x28   :  { %v82_v11 = vmul.f32 %v193_v3, %v81_v8  ;;  %v112_v13 = vsel %vm111_vm4, %v191_v62, %v108_v10 }
  0x29   :  { %v117_v15 = vsel %vm114_vm5, %v116_v7, %v112_v13 }
  0x2a   :  { %v83_v16 = vadd.f32 %v193_v3, %v82_v11  ;;  %v118_v18 = vmul.f32 %v117_v15, %v103_v12 }
  0x2c   :  { %v87_v17 = vsel %vm86_vm7, %v193_v3, %v83_v16 }
  0x2d   :  { %v92_v19 = vsel %vm89_vm8, %v91_v14, %v87_v17 }
  0x2e   :  { %v93_v20 = vmul.f32 %v92_v19, %v76_v58 }
  0x30   :  { %v119_v21 = vsub.f32 %v93_v20, %v118_v18 }
  0x32   :  { %v124_v23 = vsub.f32 1.0, %v119_v21 }
  0x34   :  { %v125_v24 = vadd.f32 %v124_v23, %v123_v22 }
  0x36   :  { %126 = vst [vmem:[#allocation3] sm:$0x1] %v125_v24 }
  0x3d   :  { %v142_v25 = vld [vmem:[#allocation3] sm:$0x1] }
  0x3e   :  { %v143_v26 = vsel %vm131_vm0, %v142_v25, 0.0 }
  0x3f   :  { %144 = vadd.xlane.f32.xlu0 %v143_v26 }
  0x92   :  { %v134_v27 = vpop.xlane.xlu0 %133 }
  0x93   :  { %v135_v28 = vrot.slane %v134_v27, 4 }
  0x95   :  { %v136_v29 = vadd.f32 %v135_v28, %v134_v27 }
  0x97   :  { %v137_v30 = vrot.slane %v136_v29, 2 }
  0x99   :  { %v138_v31 = vadd.f32 %v137_v30, %v136_v29 }
  0x9b   :  { %v139_v32 = vrot.slane %v138_v31, 1 }
  0x9d   :  { %v140_v33 = vadd.f32 %v139_v32, %v138_v31 }
  0x9f   :  { %181 = vpush %v140_v33 }
  0xb2   :  { %v145_v34 = vpop.xlane.xlu0 %144 }
  0xb3   :  { %v146_v35 = vrot.slane %v145_v34, 4 }
  0xb5   :  { %v147_v36 = vadd.f32 %v146_v35, %v145_v34 }
  0xb7   :  { %v148_v37 = vrot.slane %v147_v36, 2 }
  0xb9   :  { %v149_v38 = vadd.f32 %v148_v37, %v147_v36 }
  0xbb   :  { %v150_v39 = vrot.slane %v149_v38, 1 }
  0xbd   :  { %v151_v40 = vadd.f32 %v150_v39, %v149_v38 }
  0xbf   :  { %183 = vpush %v151_v40 }
  0xd0   :  { %s182_s0 = spop %181 }
  0xd1   :  { %s156_s15 = smul.f32 0.625, %s182_s0 }
  0xd3   :  { %v161_v44 = vstv %s156_s15 }
  0xf0   :  { %s184_s16 = spop %183 }
  0xf1   :  { %s158_s17 = smul.f32 0.25, %s184_s16 }
  0xf3   :  { %v159_v43 = vstv %s158_s17 }
  0xf4   :  { %v160_v45 = vsel %vm157_vm9, %v159_v43, 0.0 }
  0xf5   :  { %v162_v46 = vsel %vm155_vm10, %v161_v44, %v160_v45 }
  0xf6   :  { %163 = vst [vmem:[#allocation7] sm:$0x1] %v162_v46 }
  0xf7   :  { %174 = dma.vmem_to_hbm [thread:$0]  %s170_s14, 16, %s172_s20, [#allocation6]  }
  0xf8   :  { %244 = dma.done.wait [#allocation6], 16  }
  0xf9   :  { %245 = vsyncadd [#allocation6], 4294967280 }
  0xfa   :  { %179 = vsyncpa [#allocation5], 1 }
  0xfb   :  { %180 = vsyncpa [#allocation6], 1 }

</bundles_post_ra>
